<compile_context>
chip_gen: v7x
topology: tpu7x:2x2x1
jax: 0.10.0
libtpu: 0.0.40
codegen_flags: <defaults>
</compile_context>

<pallas_src>
import functools

import jax
import jax.numpy as jnp
from jax.experimental import pallas as pl
from jax.experimental.pallas import tpu as pltpu

_MIB = 1024 * 1024


# ----------------------------------------------------------------------------
# Kernel
# ----------------------------------------------------------------------------
def ann_kernel(x_ref, w1_ref, b1_ref, w2_ref, b2_ref, w3_ref, b3_ref, o_ref):
    # x tile: (TM, IN_P) in the MXU compute dtype (bf16 or f32).
    # Weights: VMEM-resident blocks in the compute dtype.
    # Biases:  VMEM-resident blocks in f32; bias add / ReLU stay f32.
    x = x_ref[...]

    h1 = jnp.dot(x, w1_ref[...], preferred_element_type=jnp.float32)
    h1 = h1 + b1_ref[...]

    h2 = jnp.dot(h1.astype(w2_ref.dtype), w2_ref[...],
                 preferred_element_type=jnp.float32)
    h2 = h2 + b2_ref[...]
    h2 = jnp.maximum(h2, 0.0)  # act_fn = ReLU

    y = jnp.dot(h2.astype(w3_ref.dtype), w3_ref[...],
                preferred_element_type=jnp.float32)
    y = y + b3_ref[...]

    o_ref[...] = y.astype(o_ref.dtype)


# ----------------------------------------------------------------------------
# Helpers
# ----------------------------------------------------------------------------
def _round_up(n, m):
    return ((n + m - 1) // m) * m


def _lane_pad(dim):
    # <=128: one full MXU lane group. >128: pad to 256 multiples to match the
    # 256x256 MXUs on v6e/v7x (harmless on v5e's 128x128 MXUs).
    return _round_up(dim, 128) if dim <= 128 else _round_up(dim, 256)


def _pad2(a, rows, cols):
    return jnp.pad(a, ((0, rows - a.shape[0]), (0, cols - a.shape[1])))


@functools.lru_cache(maxsize=1)
def _vmem_limit_bytes():
    """Scoped VMEM request with headroom: ~80% of physical, capped at 64 MiB.

    -> 64 MiB on v5e/v6e (128 MiB physical), ~51 MiB on v7x (64 MiB physical),
    so the compiler keeps room for internal scratch and never over-requests.
    """
    cap = None
    try:
        cap = getattr(pltpu.get_tpu_info(), "vmem_capacity_bytes", None)
    except Exception:
        cap = None
    if not cap:
        cap = 64 * _MIB  # conservative fallback (v7x physical per-TC)
    return int(min(64 * _MIB, (cap * 4) // 5))


def _pick_tiling(batch, in_p, hid_p, out_p, compute_itemsize, out_itemsize,
                 vmem_budget, tm_max, single_buffer_weights):
    """Choose (TM, padded batch, grid steps).

    TM is the largest multiple of 16 whose double-buffered x/out tiles plus
    f32 intermediates fit the VMEM budget next to the resident weights; the
    step count is then chosen >= 2 (and even) whenever batch allows so the
    "parallel" batch axis keeps both v7x TensorCores busy, while batch padding
    stays within one sublane group per step.
    """
    batch16 = _round_up(batch, 16)
    tm_max = max(16, (tm_max // 16) * 16)

    w_bufs = 1 if single_buffer_weights else 2
    weight_bytes = w_bufs * (
        (in_p * hid_p + hid_p * hid_p + hid_p * out_p) * compute_itemsize
        + (2 * hid_p + out_p) * 4)
    per_row = (2 * in_p * compute_itemsize      # double-buffered x tile
               + 2 * out_p * out_itemsize       # double-buffered out tile
               + 2 * hid_p * 4                  # h1 + h2 f32 intermediates
               + out_p * 4)                     # y f32 intermediate
    avail = max(vmem_budget - weight_bytes, per_row * 16)
    tm_cap = max(16, min(tm_max, (avail // per_row) // 16 * 16))

    if batch16 >= 32:
        n_steps = max(2, -(-batch16 // tm_cap))  # >= 2 steps for megacore
        if n_steps % 2:
            n_steps += 1                         # balanced split across 2 TCs
    else:
        n_steps = 1
    tm = min(tm_cap, _round_up(-(-batch16 // n_steps), 16))
    return tm, tm * n_steps, n_steps


# ----------------------------------------------------------------------------
# Parameter preparation (done ONCE, reused across forward calls)
# ----------------------------------------------------------------------------
def prepare_padded_params(params, *, compute_dtype=jnp.bfloat16):
    """Lane-pad and cast weights/biases once. Zero padding is exact for
    Linear -> Linear+ReLU -> Linear chains (padded input columns meet zero
    weight rows; padded output lanes get zero weights + zero bias; ReLU(0)=0
    feeds zero rows of the next weight)."""
    w1, b1, w2, b2, w3, b3 = params
    in_dim, hid_dim = w1.shape
    out_dim = w3.shape[1]
    in_p, hid_p, out_p = _lane_pad(in_dim), _lane_pad(hid_dim), _lane_pad(out_dim)

    w1_p = _pad2(w1, in_p, hid_p).astype(compute_dtype)
    w2_p = _pad2(w2, hid_p, hid_p).astype(compute_dtype)
    w3_p = _pad2(w3, hid_p, out_p).astype(compute_dtype)
    b1_p = _pad2(b1, 1, hid_p).astype(jnp.float32)
    b2_p = _pad2(b2, 1, hid_p).astype(jnp.float32)
    b3_p = _pad2(b3, 1, out_p).astype(jnp.float32)
    return (w1_p, b1_p, w2_p, b2_p, w3_p, b3_p)


# ----------------------------------------------------------------------------
# Forward
# ----------------------------------------------------------------------------
@functools.partial(
    jax.jit,
    static_argnames=("out_dim", "out_dtype", "tm_max", "single_buffer_weights"))
def ann_forward(x, padded_params, *, out_dim, out_dtype=None, tm_max=2048,
                single_buffer_weights=True):
    """Runs the fused 3-layer MLP. Returns (batch, out_dim) in out_dtype
    (defaults to the compute dtype of the prepared weights)."""
    w1_p, b1_p, w2_p, b2_p, w3_p, b3_p = padded_params
    compute_dtype = w1_p.dtype
    if out_dtype is None:
        out_dtype = compute_dtype

    batch, _ = x.shape
    in_p, hid_p = w1_p.shape
    out_p = w3_p.shape[1]

    compute_itemsize = jnp.dtype(compute_dtype).itemsize
    out_itemsize = jnp.dtype(out_dtype).itemsize

    vmem_limit = _vmem_limit_bytes()
    tm, batch_p, n_steps = _pick_tiling(
        batch, in_p, hid_p, out_p, compute_itemsize, out_itemsize,
        vmem_budget=vmem_limit - 4 * _MIB, tm_max=tm_max,
        single_buffer_weights=single_buffer_weights)

    # Only x is padded/cast per call; weights/biases were prepared once.
    x_p = _pad2(x, batch_p, in_p).astype(compute_dtype)

    def resident(a):
        # Constant block index -> loaded once, VMEM-resident across the grid.
        if single_buffer_weights:
            return pl.BlockSpec(a.shape, lambda i: (0, 0),
                                pipeline_mode=pl.Buffered(1))
        return pl.BlockSpec(a.shape, lambda i: (0, 0))

    flops = 2 * batch_p * (in_p * hid_p + hid_p * hid_p + hid_p * out_p)
    bytes_accessed = (
        batch_p * in_p * compute_itemsize
        + sum(int(a.size) * a.dtype.itemsize for a in padded_params)
        + batch_p * out_p * out_itemsize)

    y_p = pl.pallas_call(
        ann_kernel,
        out_shape=jax.ShapeDtypeStruct((batch_p, out_p), out_dtype),
        grid=(n_steps,),
        in_specs=[
            pl.BlockSpec((tm, in_p), lambda i: (i, 0)),   # x: pipelined tiles
            resident(w1_p), resident(b1_p),
            resident(w2_p), resident(b2_p),
            resident(w3_p), resident(b3_p),
        ],
        out_specs=pl.BlockSpec((tm, out_p), lambda i: (i, 0)),
        compiler_params=pltpu.CompilerParams(
            dimension_semantics=("parallel",),   # megacore shard on v7x
            vmem_limit_bytes=vmem_limit,
        ),
        cost_estimate=pl.CostEstimate(
            flops=int(flops), transcendentals=0,
            bytes_accessed=int(bytes_accessed)),
    )(x_p, w1_p, b1_p, w2_p, b2_p, w3_p, b3_p)

    # Strip batch / lane padding.
    return y_p[:batch, :out_dim]


# ----------------------------------------------------------------------------
# Params + reference
# ----------------------------------------------------------------------------
def init_params(key, in_dim, hid_dim, out_dim):
    """nn.Linear-style uniform(-1/sqrt(fan_in), 1/sqrt(fan_in)) init.
    Weights stored as (in_features, out_features); biases as (1, out_features)."""
    ks = jax.random.split(key, 6)

    def linear(kw, kb, fan_in, fan_out):
        bound = 1.0 / jnp.sqrt(jnp.float32(fan_in))
        w = jax.random.uniform(kw, (fan_in, fan_out), jnp.float32, -bound, bound)
        b = jax.random.uniform(kb, (1, fan_out), jnp.float32, -bound, bound)
        return w, b

    w1, b1 = linear(ks[0], ks[1], in_dim, hid_dim)
    w2, b2 = linear(ks[2], ks[3], hid_dim, hid_dim)
    w3, b3 = linear(ks[4], ks[5], hid_dim, out_dim)
    return (w1, b1, w2, b2, w3, b3)


def ann_reference(x, params):
    w1, b1, w2, b2, w3, b3 = params
    h1 = x @ w1 + b1
    h2 = jnp.maximum(h1 @ w2 + b2, 0.0)
    return h2 @ w3 + b3


# ----------------------------------------------------------------------------
# Test
# ----------------------------------------------------------------------------
if __name__ == "__main__":
    in_dim, hid_dim, out_dim = 16, 32, 8

    key = jax.random.PRNGKey(0)
    k_x1, k_x2, k_p = jax.random.split(key, 3)
    params = init_params(k_p, in_dim, hid_dim, out_dim)

    # Pad + cast weights ONCE per compute dtype (not on every forward call).
    pparams_f32 = prepare_padded_params(params, compute_dtype=jnp.float32)
    pparams_bf16 = prepare_padded_params(params, compute_dtype=jnp.bfloat16)

    single_buffer = True  # flips to False if pl.Buffered(1) is unsupported

    def run(x, pparams, **kw):
        global single_buffer
        try:
            return ann_forward(x, pparams, out_dim=out_dim,
                               single_buffer_weights=single_buffer, **kw)
        except Exception:
            if not single_buffer:
                raise
            # This jax/Mosaic build rejected pipeline_mode=pl.Buffered(1);
            # fall back to default double-buffered resident weights.
            single_buffer = False
            return ann_forward(x, pparams, out_dim=out_dim,
                               single_buffer_weights=False, **kw)

    # Case 1: tiny batch (single grid step), exact f32 path, tight tolerance.
    x_small = jax.random.normal(k_x1, (8, in_dim), jnp.float32)
    y_f32 = jax.block_until_ready(
        run(x_small, pparams_f32, out_dtype=jnp.float32))
    y_ref_small = ann_reference(x_small, params)
    assert y_f32.shape == (8, out_dim)
    assert jnp.allclose(y_f32, y_ref_small, atol=1e-5, rtol=1e-5)

    # Case 2: larger batch -> multi-step pipelined grid (2 balanced steps for
    # the v7x megacore split), bf16 MXU operands + bf16 output stream with f32
    # accumulation, loose tolerance.
    x_large = jax.random.normal(k_x2, (300, in_dim), jnp.float32)
    y_bf16 = jax.block_until_ready(run(x_large, pparams_bf16))
    y_ref_large = ann_reference(x_large, params)
    assert y_bf16.shape == (300, out_dim)
    assert jnp.allclose(y_bf16.astype(jnp.float32), y_ref_large,
                        atol=5e-2, rtol=5e-2)

    print("KERNEL_OK")
</pallas_src>

<mosaic_0001>
module attributes {stable_mosaic.version = 11 : i64} {
  func.func @ann_kernel(%arg0: i32, %arg1: memref<16x128xf32, #tpu.memory_space<vmem>>, %arg2: memref<128x128xf32, #tpu.memory_space<vmem>>, %arg3: memref<1x128xf32, #tpu.memory_space<vmem>>, %arg4: memref<128x128xf32, #tpu.memory_space<vmem>>, %arg5: memref<1x128xf32, #tpu.memory_space<vmem>>, %arg6: memref<128x128xf32, #tpu.memory_space<vmem>>, %arg7: memref<1x128xf32, #tpu.memory_space<vmem>>, %arg8: memref<16x128xf32, #tpu.memory_space<vmem>>) attributes {dimension_semantics = [#tpu.dimension_semantics<parallel>], iteration_bounds = array<i64: 1>, scalar_prefetch = 0 : i64, scratch_operands = 0 : i64, tpu.core_type = #tpu.core_type<tc>, window_params = [{transform_indices = @transform_0, window_bounds = array<i64: 16, 128>}, {pipeline_mode = #tpu.pipeline_mode<synchronous>, transform_indices = @transform_1, window_bounds = array<i64: 128, 128>}, {pipeline_mode = #tpu.pipeline_mode<synchronous>, transform_indices = @transform_2, window_bounds = array<i64: 1, 128>}, {pipeline_mode = #tpu.pipeline_mode<synchronous>, transform_indices = @transform_3, window_bounds = array<i64: 128, 128>}, {pipeline_mode = #tpu.pipeline_mode<synchronous>, transform_indices = @transform_4, window_bounds = array<i64: 1, 128>}, {pipeline_mode = #tpu.pipeline_mode<synchronous>, transform_indices = @transform_5, window_bounds = array<i64: 128, 128>}, {pipeline_mode = #tpu.pipeline_mode<synchronous>, transform_indices = @transform_6, window_bounds = array<i64: 1, 128>}, {transform_indices = @transform_7, window_bounds = array<i64: 16, 128>}]} {
    %c0 = arith.constant 0 : index
    %c0_0 = arith.constant 0 : index
    %0 = vector.load %arg1[%c0, %c0_0] : memref<16x128xf32, #tpu.memory_space<vmem>>, vector<16x128xf32>
    %c0_1 = arith.constant 0 : index
    %c0_2 = arith.constant 0 : index
    %1 = vector.load %arg2[%c0_1, %c0_2] : memref<128x128xf32, #tpu.memory_space<vmem>>, vector<128x128xf32>
    %cst = arith.constant dense<0.000000e+00> : vector<16x128xf32>
    %2 = tpu.matmul %0, %1, %cst {dimension_numbers = #tpu.dot_dimension_numbers<[1], [0], [0], [1], [0, 0, 1, 1], [], []>} : vector<16x128xf32>, vector<128x128xf32>, vector<16x128xf32> -> vector<16x128xf32>
    %c0_3 = arith.constant 0 : index
    %c0_4 = arith.constant 0 : index
    %3 = vector.load %arg3[%c0_3, %c0_4] : memref<1x128xf32, #tpu.memory_space<vmem>>, vector<1x128xf32>
    %4 = vector.broadcast %3 : vector<1x128xf32> to vector<16x128xf32>
    %5 = arith.addf %2, %4 : vector<16x128xf32>
    %c0_5 = arith.constant 0 : index
    %c0_6 = arith.constant 0 : index
    %6 = vector.load %arg4[%c0_5, %c0_6] : memref<128x128xf32, #tpu.memory_space<vmem>>, vector<128x128xf32>
    %cst_7 = arith.constant dense<0.000000e+00> : vector<16x128xf32>
    %7 = tpu.matmul %5, %6, %cst_7 {dimension_numbers = #tpu.dot_dimension_numbers<[1], [0], [0], [1], [0, 0, 1, 1], [], []>} : vector<16x128xf32>, vector<128x128xf32>, vector<16x128xf32> -> vector<16x128xf32>
    %c0_8 = arith.constant 0 : index
    %c0_9 = arith.constant 0 : index
    %8 = vector.load %arg5[%c0_8, %c0_9] : memref<1x128xf32, #tpu.memory_space<vmem>>, vector<1x128xf32>
    %9 = vector.broadcast %8 : vector<1x128xf32> to vector<16x128xf32>
    %10 = arith.addf %7, %9 : vector<16x128xf32>
    %cst_10 = arith.constant 0.000000e+00 : f32
    %11 = vector.broadcast %cst_10 : f32 to vector<16x128xf32>
    %12 = arith.maximumf %10, %11 : vector<16x128xf32>
    %c0_11 = arith.constant 0 : index
    %c0_12 = arith.constant 0 : index
    %13 = vector.load %arg6[%c0_11, %c0_12] : memref<128x128xf32, #tpu.memory_space<vmem>>, vector<128x128xf32>
    %cst_13 = arith.constant dense<0.000000e+00> : vector<16x128xf32>
    %14 = tpu.matmul %12, %13, %cst_13 {dimension_numbers = #tpu.dot_dimension_numbers<[1], [0], [0], [1], [0, 0, 1, 1], [], []>} : vector<16x128xf32>, vector<128x128xf32>, vector<16x128xf32> -> vector<16x128xf32>
    %c0_14 = arith.constant 0 : index
    %c0_15 = arith.constant 0 : index
    %15 = vector.load %arg7[%c0_14, %c0_15] : memref<1x128xf32, #tpu.memory_space<vmem>>, vector<1x128xf32>
    %16 = vector.broadcast %15 : vector<1x128xf32> to vector<16x128xf32>
    %17 = arith.addf %14, %16 : vector<16x128xf32>
    %c0_16 = arith.constant 0 : index
    %c0_17 = arith.constant 0 : index
    %18 = vector.load %arg8[%c0_16, %c0_17] : memref<16x128xf32, #tpu.memory_space<vmem>>, vector<16x128xf32>
    tpu.vector_store %arg8[%c0_16, %c0_17], %17 {strides = array<i32>} : memref<16x128xf32, #tpu.memory_space<vmem>>, vector<16x128xf32>,
    return
  }
  func.func @transform_0(%arg0: i32) -> (i32, i32) {
    %c0_i32 = arith.constant 0 : i32
    %c0_i32_0 = arith.constant 0 : i32
    return %arg0, %c0_i32 : i32, i32
  }
  func.func @transform_1(%arg0: i32) -> (i32, i32) {
    %c0_i32 = arith.constant 0 : i32
    %c0_i32_0 = arith.constant 0 : i32
    %c0_i32_1 = arith.constant 0 : i32
    return %c0_i32, %c0_i32_0 : i32, i32
  }
  func.func @transform_2(%arg0: i32) -> (i32, i32) {
    %c0_i32 = arith.constant 0 : i32
    %c0_i32_0 = arith.constant 0 : i32
    %c0_i32_1 = arith.constant 0 : i32
    return %c0_i32, %c0_i32_0 : i32, i32
  }
  func.func @transform_3(%arg0: i32) -> (i32, i32) {
    %c0_i32 = arith.constant 0 : i32
    %c0_i32_0 = arith.constant 0 : i32
    %c0_i32_1 = arith.constant 0 : i32
    return %c0_i32, %c0_i32_0 : i32, i32
  }
  func.func @transform_4(%arg0: i32) -> (i32, i32) {
    %c0_i32 = arith.constant 0 : i32
    %c0_i32_0 = arith.constant 0 : i32
    %c0_i32_1 = arith.constant 0 : i32
    return %c0_i32, %c0_i32_0 : i32, i32
  }
  func.func @transform_5(%arg0: i32) -> (i32, i32) {
    %c0_i32 = arith.constant 0 : i32
    %c0_i32_0 = arith.constant 0 : i32
    %c0_i32_1 = arith.constant 0 : i32
    return %c0_i32, %c0_i32_0 : i32, i32
  }
  func.func @transform_6(%arg0: i32) -> (i32, i32) {
    %c0_i32 = arith.constant 0 : i32
    %c0_i32_0 = arith.constant 0 : i32
    %c0_i32_1 = arith.constant 0 : i32
    return %c0_i32, %c0_i32_0 : i32, i32
  }
  func.func @transform_7(%arg0: i32) -> (i32, i32) {
    %c0_i32 = arith.constant 0 : i32
    %c0_i32_0 = arith.constant 0 : i32
    return %arg0, %c0_i32 : i32, i32
  }
}

module attributes {stable_mosaic.version = 11 : i64} {
  func.func @ann_kernel(%arg0: i32, %arg1: memref<16x128xf32, #tpu.memory_space<vmem>>, %arg2: memref<128x128xf32, #tpu.memory_space<vmem>>, %arg3: memref<1x128xf32, #tpu.memory_space<vmem>>, %arg4: memref<128x128xf32, #tpu.memory_space<vmem>>, %arg5: memref<1x128xf32, #tpu.memory_space<vmem>>, %arg6: memref<128x128xf32, #tpu.memory_space<vmem>>, %arg7: memref<1x128xf32, #tpu.memory_space<vmem>>, %arg8: memref<16x128xf32, #tpu.memory_space<vmem>>) attributes {dimension_semantics = [#tpu.dimension_semantics<parallel>], iteration_bounds = array<i64: 1>, scalar_prefetch = 0 : i64, scratch_operands = 0 : i64, tpu.core_type = #tpu.core_type<tc>, window_params = [{transform_indices = @transform_0, window_bounds = array<i64: 16, 128>}, {pipeline_mode = #tpu.pipeline_mode<synchronous>, transform_indices = @transform_1, window_bounds = array<i64: 128, 128>}, {pipeline_mode = #tpu.pipeline_mode<synchronous>, transform_indices = @transform_2, window_bounds = array<i64: 1, 128>}, {pipeline_mode = #tpu.pipeline_mode<synchronous>, transform_indices = @transform_3, window_bounds = array<i64: 128, 128>}, {pipeline_mode = #tpu.pipeline_mode<synchronous>, transform_indices = @transform_4, window_bounds = array<i64: 1, 128>}, {pipeline_mode = #tpu.pipeline_mode<synchronous>, transform_indices = @transform_5, window_bounds = array<i64: 128, 128>}, {pipeline_mode = #tpu.pipeline_mode<synchronous>, transform_indices = @transform_6, window_bounds = array<i64: 1, 128>}, {transform_indices = @transform_7, window_bounds = array<i64: 16, 128>}]} {
    %c0 = arith.constant 0 : index
    %c0_0 = arith.constant 0 : index
    %0 = vector.load %arg1[%c0, %c0_0] : memref<16x128xf32, #tpu.memory_space<vmem>>, vector<16x128xf32>
    %c0_1 = arith.constant 0 : index
    %c0_2 = arith.constant 0 : index
    %1 = vector.load %arg2[%c0_1, %c0_2] : memref<128x128xf32, #tpu.memory_space<vmem>>, vector<128x128xf32>
    %cst = arith.constant dense<0.000000e+00> : vector<16x128xf32>
    %2 = tpu.matmul %0, %1, %cst {dimension_numbers = #tpu.dot_dimension_numbers<[1], [0], [0], [1], [0, 0, 1, 1], [], []>} : vector<16x128xf32>, vector<128x128xf32>, vector<16x128xf32> -> vector<16x128xf32>
    %c0_3 = arith.constant 0 : index
    %c0_4 = arith.constant 0 : index
    %3 = vector.load %arg3[%c0_3, %c0_4] : memref<1x128xf32, #tpu.memory_space<vmem>>, vector<1x128xf32>
    %4 = vector.broadcast %3 : vector<1x128xf32> to vector<16x128xf32>
    %5 = arith.addf %2, %4 : vector<16x128xf32>
    %c0_5 = arith.constant 0 : index
    %c0_6 = arith.constant 0 : index
    %6 = vector.load %arg4[%c0_5, %c0_6] : memref<128x128xf32, #tpu.memory_space<vmem>>, vector<128x128xf32>
    %cst_7 = arith.constant dense<0.000000e+00> : vector<16x128xf32>
    %7 = tpu.matmul %5, %6, %cst_7 {dimension_numbers = #tpu.dot_dimension_numbers<[1], [0], [0], [1], [0, 0, 1, 1], [], []>} : vector<16x128xf32>, vector<128x128xf32>, vector<16x128xf32> -> vector<16x128xf32>
    %c0_8 = arith.constant 0 : index
    %c0_9 = arith.constant 0 : index
    %8 = vector.load %arg5[%c0_8, %c0_9] : memref<1x128xf32, #tpu.memory_space<vmem>>, vector<1x128xf32>
    %9 = vector.broadcast %8 : vector<1x128xf32> to vector<16x128xf32>
    %10 = arith.addf %7, %9 : vector<16x128xf32>
    %cst_10 = arith.constant 0.000000e+00 : f32
    %11 = vector.broadcast %cst_10 : f32 to vector<16x128xf32>
    %12 = arith.maximumf %10, %11 : vector<16x128xf32>
    %c0_11 = arith.constant 0 : index
    %c0_12 = arith.constant 0 : index
    %13 = vector.load %arg6[%c0_11, %c0_12] : memref<128x128xf32, #tpu.memory_space<vmem>>, vector<128x128xf32>
    %cst_13 = arith.constant dense<0.000000e+00> : vector<16x128xf32>
    %14 = tpu.matmul %12, %13, %cst_13 {dimension_numbers = #tpu.dot_dimension_numbers<[1], [0], [0], [1], [0, 0, 1, 1], [], []>} : vector<16x128xf32>, vector<128x128xf32>, vector<16x128xf32> -> vector<16x128xf32>
    %c0_14 = arith.constant 0 : index
    %c0_15 = arith.constant 0 : index
    %15 = vector.load %arg7[%c0_14, %c0_15] : memref<1x128xf32, #tpu.memory_space<vmem>>, vector<1x128xf32>
    %16 = vector.broadcast %15 : vector<1x128xf32> to vector<16x128xf32>
    %17 = arith.addf %14, %16 : vector<16x128xf32>
    %c0_16 = arith.constant 0 : index
    %c0_17 = arith.constant 0 : index
    %18 = vector.load %arg8[%c0_16, %c0_17] : memref<16x128xf32, #tpu.memory_space<vmem>>, vector<16x128xf32>
    tpu.vector_store %arg8[%c0_16, %c0_17], %17 {strides = array<i32>} : memref<16x128xf32, #tpu.memory_space<vmem>>, vector<16x128xf32>,
    return
  }
  func.func @transform_0(%arg0: i32) -> (i32, i32) {
    %c0_i32 = arith.constant 0 : i32
    %c0_i32_0 = arith.constant 0 : i32
    return %arg0, %c0_i32 : i32, i32
  }
  func.func @transform_1(%arg0: i32) -> (i32, i32) {
    %c0_i32 = arith.constant 0 : i32
    %c0_i32_0 = arith.constant 0 : i32
    %c0_i32_1 = arith.constant 0 : i32
    return %c0_i32, %c0_i32_0 : i32, i32
  }
  func.func @transform_2(%arg0: i32) -> (i32, i32) {
    %c0_i32 = arith.constant 0 : i32
    %c0_i32_0 = arith.constant 0 : i32
    %c0_i32_1 = arith.constant 0 : i32
    return %c0_i32, %c0_i32_0 : i32, i32
  }
  func.func @transform_3(%arg0: i32) -> (i32, i32) {
    %c0_i32 = arith.constant 0 : i32
    %c0_i32_0 = arith.constant 0 : i32
    %c0_i32_1 = arith.constant 0 : i32
    return %c0_i32, %c0_i32_0 : i32, i32
  }
  func.func @transform_4(%arg0: i32) -> (i32, i32) {
    %c0_i32 = arith.constant 0 : i32
    %c0_i32_0 = arith.constant 0 : i32
    %c0_i32_1 = arith.constant 0 : i32
    return %c0_i32, %c0_i32_0 : i32, i32
  }
  func.func @transform_5(%arg0: i32) -> (i32, i32) {
    %c0_i32 = arith.constant 0 : i32
    %c0_i32_0 = arith.constant 0 : i32
    %c0_i32_1 = arith.constant 0 : i32
    return %c0_i32, %c0_i32_0 : i32, i32
  }
  func.func @transform_6(%arg0: i32) -> (i32, i32) {
    %c0_i32 = arith.constant 0 : i32
    %c0_i32_0 = arith.constant 0 : i32
    %c0_i32_1 = arith.constant 0 : i32
    return %c0_i32, %c0_i32_0 : i32, i32
  }
  func.func @transform_7(%arg0: i32) -> (i32, i32) {
    %c0_i32 = arith.constant 0 : i32
    %c0_i32_0 = arith.constant 0 : i32
    return %arg0, %c0_i32 : i32, i32
  }
}

</mosaic_0001>

<bundles_post_ra>
// kernel: ann_forward.1
= control target key start
LH: loop header
LB: loop body
LE: loop exit
PB: predicated region body
PF: predicated region fallthrough
CT: control target
= control target key end

     0   :  { %12 = vsyncpa [#allocation3], 0  ;;  %s824_s0 = inlined_call_operand.vmem [shape: f32[16,128], index: 0, kind: input, shape index: {}]   ;;  %s825_s1 = inlined_call_operand.hbm [shape: f32[128,128], index: 1, kind: input, shape index: {}]   ;;  %s826_s2 = inlined_call_operand.vmem [shape: f32[1,128], index: 2, kind: input, shape index: {}]   ;;  %s827_s3 = inlined_call_operand.hbm [shape: f32[128,128], index: 3, kind: input, shape index: {}]   ;;  %s828_s4 = inlined_call_operand.vmem [shape: f32[1,128], index: 4, kind: input, shape index: {}]   ;;  %s829_s5 = inlined_call_operand.hbm [shape: f32[128,128], index: 5, kind: input, shape index: {}]   ;;  %s830_s6 = inlined_call_operand.vmem [shape: f32[1,128], index: 6, kind: input, shape index: {}]   ;;  %s831_s7 = inlined_call_operand.vmem [shape: f32[16,128], index: 7, kind: output, shape index: {}]  }
   0x1   :  { %13 = vsyncpa [#allocation5], 0  ;;  %s706_s24 = smov [#allocation4]   ;;  %s707_s26 = smov [#allocation2]  }
   0x2   :  { %s35_s25 = sshll.u32 %s706_s24, 4  ;;  %s21_s27 = sshll.u32 %s707_s26, 4  ;;  %s36_s25 = int_to_ptr.vmem [resolvable:$true] %s35_s25  ;;  %s751_s27 = int_to_ptr.vmem [resolvable:$true] %s21_s27 }
   0x3   :  { %s636_s30 = scalar_lea.hbm %s827_s3, 2048 }
   0x4   :  { %p637_p0 = scmp.ne.s32.totalorder %s827_s3, %s636_s30  ;;  %p640_p1 = scmp.lt.u32.totalorder %s636_s30, %s827_s3 }
   0x6   :  { %p642_p2 = pnand %p640_p1, %p637_p0 }
   0x8   :  { %645 = shalt.err (!%p642_p2)
}
   0x9   :  { %s646_s12 = scalar_lea.vmem %s36_s25, 2048  ;;  %p651_p4 = scmp.lt.s32.totalorder %s36_s25, %s36_s25 }
   0xa   :  { %p647_p3 = scmp.ne.s32.totalorder %s36_s25, %s646_s12  ;;  %p652_p5 = scmp.lt.s32.totalorder %s646_s12, %s646_s12 }
   0xc   :  { %p653_p6 = por %p652_p5, %p651_p4 }
   0xe   :  { %p654_p7 = pnand %p653_p6, %p647_p3 }
  0x10   :  { %657 = shalt.err (!%p654_p7)
}
  0x11   :  { %s708_s13 = smov 128   ;;  %s709_s14 = smov 8  }
  0x12   :  { %41 = dma.hbm_to_vmem [thread:$0]  %s827_s3, 2048, %s36_s25, [#allocation5], %s708_s13, %s708_s13, %s709_s14  }
  0x13   :  { %s658_s19 = scalar_lea.hbm %s825_s1, 2048 }
  0x14   :  { %p659_p8 = scmp.ne.s32.totalorder %s825_s1, %s658_s19  ;;  %p662_p9 = scmp.lt.u32.totalorder %s658_s19, %s825_s1 }
  0x16   :  { %p664_p10 = pnand %p662_p9, %p659_p8 }
  0x18   :  { %667 = shalt.err (!%p664_p10)
}
  0x19   :  { %s668_s24 = scalar_lea.vmem %s751_s27, 2048  ;;  %p673_p12 = scmp.lt.s32.totalorder %s751_s27, %s751_s27 }
  0x1a   :  { %p669_p11 = scmp.ne.s32.totalorder %s751_s27, %s668_s24  ;;  %p674_p13 = scmp.lt.s32.totalorder %s668_s24, %s668_s24 }
  0x1c   :  { %p675_p0 = por %p674_p13, %p673_p12 }
  0x1e   :  { %p676_p1 = pnand %p675_p0, %p669_p11 }
  0x20   :  { %679 = shalt.err (!%p676_p1)
}
  0x21   :  { %27 = dma.hbm_to_vmem [thread:$0]  %s825_s1, 2048, %s751_s27, [#allocation3], %s708_s13, %s708_s13, %s709_s14  }
  0x22   :  { %s710_s26 = smov [#allocation6]   ;;  %s680_s8 = scalar_lea.hbm %s829_s5, 2048 }
  0x23   :  { %s49_s28 = sshll.u32 %s710_s26, 4  ;;  %p681_p2 = scmp.ne.s32.totalorder %s829_s5, %s680_s8  ;;  %s50_s28 = int_to_ptr.vmem [resolvable:$true] %s49_s28 }
  0x24   :  { %p684_p3 = scmp.lt.u32.totalorder %s680_s8, %s829_s5 }
  0x26   :  { %p686_p4 = pnand %p684_p3, %p681_p2 }
  0x28   :  { %689 = shalt.err (!%p686_p4)
}
  0x29   :  { %s690_s15 = scalar_lea.vmem %s50_s28, 2048  ;;  %p695_p6 = scmp.lt.s32.totalorder %s50_s28, %s50_s28 }
  0x2a   :  { %p691_p5 = scmp.ne.s32.totalorder %s50_s28, %s690_s15  ;;  %p696_p7 = scmp.lt.s32.totalorder %s690_s15, %s690_s15 }
  0x2c   :  { %p697_p8 = por %p696_p7, %p695_p6 }
  0x2e   :  { %p698_p9 = pnand %p697_p8, %p691_p5 }
  0x30   :  { %701 = shalt.err (!%p698_p9)
}
  0x31   :  { %55 = dma.hbm_to_vmem [thread:$0]  %s829_s5, 2048, %s50_s28, [#allocation5], %s708_s13, %s708_s13, %s709_s14  }
  0x32   :  { %702 = dma.done.wait [#allocation3], 2048  }
  0x33   :  { %703 = vsyncadd [#allocation3], 4294965248 }
  0x34   :  { %704 = dma.done.wait [#allocation5], 4096  }
  0x35   :  { %705 = vsyncadd [#allocation5], 4294963200  ;;  %v69_v0 = vld [vmem:[#allocation2] sm:$0xff]  ;;  %v70_v1 = vld [vmem:[#allocation2 + $0x8] sm:$0xff] }
  0x36   :  { %v71_v2 = vld [vmem:[#allocation2 + $0x10] sm:$0xff]  ;;  %v535_v3 = vpack.c.bf16 %v70_v1, %v69_v0  ;;  %v72_v4 = vld [vmem:[#allocation2 + $0x18] sm:$0xff]  ;;  %v73_v6 = vld [vmem:[#allocation2 + $0x20] sm:$0xff] }
  0x37   :  { %v539_v5 = vpack.c.bf16 %v72_v4, %v71_v2  ;;  %v74_v7 = vld [vmem:[#allocation2 + $0x28] sm:$0xff]  ;;  %v75_v9 = vld [vmem:[#allocation2 + $0x30] sm:$0xff]  ;;  %v76_v10 = vld [vmem:[#allocation2 + $0x38] sm:$0xff] }
  0x38   :  { %536 = vmatprep.subr.bf16.mxu0 %v535_v3  ;;  %v543_v8 = vpack.c.bf16 %v74_v7, %v73_v6  ;;  %v67_v11 = vld [vmem:[%s824_s0] sm:$0xff]  ;;  %v168_v13 = vld [vmem:[#allocation4 + $0x8] sm:$0xff]  ;;  %v169_v14 = vld [vmem:[#allocation4 + $0x10] sm:$0xff]  ;;  %v547_v20 = vpack.c.bf16 %v76_v10, %v75_v9 }
  0x39   :  { %538 = vmatpush3.bf16.msra.mxu0 %v535_v3  ;;  %462 = vmatprep.mubr.f32.mxu0 %v67_v11  ;;  %v167_v12 = vld [vmem:[#allocation4] sm:$0xff]  ;;  %v170_v16 = vld [vmem:[#allocation4 + $0x18] sm:$0xff]  ;;  %v172_v19 = vld [vmem:[#allocation4 + $0x28] sm:$0xff] }
  0x3a   :  { %540 = vmatprep.subr.bf16.mxu0 %v539_v5  ;;  %v567_v15 = vpack.c.bf16 %v168_v13, %v167_v12  ;;  %v571_v17 = vpack.c.bf16 %v170_v16, %v169_v14  ;;  %v171_v18 = vld [vmem:[#allocation4 + $0x20] sm:$0xff]  ;;  %v78_v22 = vld [vmem:[#allocation2 + $0x48] sm:$0xff]  ;;  %v173_v24 = vld [vmem:[#allocation4 + $0x30] sm:$0xff] }
  0x3b   :  { %v77_v21 = vld [vmem:[#allocation2 + $0x40] sm:$0xff]  ;;  %v575_v23 = vpack.c.bf16 %v172_v19, %v171_v18  ;;  %v174_v25 = vld [vmem:[#allocation4 + $0x38] sm:$0xff]  ;;  %v79_v27 = vld [vmem:[#allocation2 + $0x50] sm:$0xff] }
  0x3c   :  { %568 = vmatprep.subr.bf16.mxu1 %v567_v15  ;;  %v551_v26 = vpack.c.bf16 %v78_v22, %v77_v21  ;;  %v80_v28 = vld [vmem:[#allocation2 + $0x58] sm:$0xff]  ;;  %v579_v29 = vpack.c.bf16 %v174_v25, %v173_v24  ;;  %v175_v30 = vld [vmem:[#allocation4 + $0x40] sm:$0xff]  ;;  %v176_v31 = vld [vmem:[#allocation4 + $0x48] sm:$0xff] }
  0x3d   :  { %542 = vmatpush3.bf16.msra.mxu0 %v539_v5  ;;  %570 = vmatpush3.bf16.msra.mxu1 %v567_v15  ;;  %v555_v32 = vpack.c.bf16 %v80_v28, %v79_v27  ;;  %v81_v33 = vld [vmem:[#allocation2 + $0x60] sm:$0xff]  ;;  %v82_v34 = vld [vmem:[#allocation2 + $0x68] sm:$0xff]  ;;  %v583_v35 = vpack.c.bf16 %v176_v31, %v175_v30  ;;  %v177_v36 = vld [vmem:[#allocation4 + $0x50] sm:$0xff] }
  0x3e   :  { %544 = vmatprep.subr.bf16.mxu0 %v543_v8  ;;  %572 = vmatprep.subr.bf16.mxu1 %v571_v17  ;;  %v178_v37 = vld [vmem:[#allocation4 + $0x58] sm:$0xff]  ;;  %v559_v38 = vpack.c.bf16 %v82_v34, %v81_v33  ;;  %v83_v39 = vld [vmem:[#allocation2 + $0x70] sm:$0xff]  ;;  %v179_v42 = vld [vmem:[#allocation4 + $0x60] sm:$0xff] }
  0x3f   :  { %v84_v40 = vld [vmem:[#allocation2 + $0x78] sm:$0xff]  ;;  %v587_v41 = vpack.c.bf16 %v178_v37, %v177_v36  ;;  %v180_v43 = vld [vmem:[#allocation4 + $0x68] sm:$0xff]  ;;  %v181_v47 = vld [vmem:[#allocation4 + $0x70] sm:$0xff] }
  0x40   :  { %v563_v44 = vpack.c.bf16 %v84_v40, %v83_v39  ;;  %v591_v45 = vpack.c.bf16 %v180_v43, %v179_v42  ;;  %v68_v46 = vld [vmem:[%s824_s0 + $0x8] sm:$0xff]  ;;  %v182_v48 = vld [vmem:[#allocation4 + $0x78] sm:$0xff]  ;;  %v267_v50 = vld [vmem:[#allocation6] sm:$0xff] }
  0x41   :  { %546 = vmatpush3.bf16.msra.mxu0 %v543_v8  ;;  %574 = vmatpush3.bf16.msra.mxu1 %v571_v17  ;;  %v595_v49 = vpack.c.bf16 %v182_v48, %v181_v47  ;;  %v268_v51 = vld [vmem:[#allocation6 + $0x8] sm:$0xff]  ;;  %v269_v52 = vld [vmem:[#allocation6 + $0x10] sm:$0xff]  ;;  %v270_v54 = vld [vmem:[#allocation6 + $0x18] sm:$0xff] }
  0x42   :  { %548 = vmatprep.subr.bf16.mxu0 %v547_v20  ;;  %576 = vmatprep.subr.bf16.mxu1 %v575_v23  ;;  %v599_v53 = vpack.c.bf16 %v268_v51, %v267_v50  ;;  %v603_v55 = vpack.c.bf16 %v270_v54, %v269_v52  ;;  %v271_v56 = vld [vmem:[#allocation6 + $0x20] sm:$0xff]  ;;  %v272_v57 = vld [vmem:[#allocation6 + $0x28] sm:$0xff]  ;;  %v273_v59 = vld [vmem:[#allocation6 + $0x30] sm:$0xff] }
  0x43   :  { %v607_v58 = vpack.c.bf16 %v272_v57, %v271_v56  ;;  %v274_v60 = vld [vmem:[#allocation6 + $0x38] sm:$0xff]  ;;  %v275_v62 = vld [vmem:[#allocation6 + $0x40] sm:$0xff]  ;;  %v276_v63 = vld [vmem:[#allocation6 + $0x48] sm:$0xff] }
  0x44   :  { %v611_v61 = vpack.c.bf16 %v274_v60, %v273_v59  ;;  %v615_v0 = vpack.c.bf16 %v276_v63, %v275_v62  ;;  %v277_v1 = vld [vmem:[#allocation6 + $0x50] sm:$0xff]  ;;  %v278_v2 = vld [vmem:[#allocation6 + $0x58] sm:$0xff]  ;;  %v279_v4 = vld [vmem:[#allocation6 + $0x60] sm:$0xff] }
  0x45   :  { %550 = vmatpush3.bf16.msra.mxu0 %v547_v20  ;;  %578 = vmatpush3.bf16.msra.mxu1 %v575_v23  ;;  %v619_v3 = vpack.c.bf16 %v278_v2, %v277_v1  ;;  %v280_v5 = vld [vmem:[#allocation6 + $0x68] sm:$0xff]  ;;  %v373_v7 = vld [vmem:[%s826_s2] ss:$0 sm:$0xff]  ;;  %v281_v12 = vld [vmem:[#allocation6 + $0x70] sm:$0xff] }
  0x46   :  { %552 = vmatprep.subr.bf16.mxu0 %v551_v26  ;;  %580 = vmatprep.subr.bf16.mxu1 %v579_v29  ;;  %v623_v6 = vpack.c.bf16 %v280_v5, %v279_v4  ;;  %v282_v13 = vld [vmem:[#allocation6 + $0x78] sm:$0xff]  ;;  %v374_v15 = vld [vmem:[%s828_s4] ss:$0 sm:$0xff] }
  0x47   :  { %v627_v14 = vpack.c.bf16 %v282_v13, %v281_v12  ;;  %v375_v22 = vld [vmem:[%s830_s6] ss:$0 sm:$0xff] }
  0x49   :  { %554 = vmatpush3.bf16.msra.mxu0 %v551_v26  ;;  %582 = vmatpush3.bf16.msra.mxu1 %v579_v29 }
  0x4a   :  { %556 = vmatprep.subr.bf16.mxu0 %v555_v32  ;;  %584 = vmatprep.subr.bf16.mxu1 %v583_v35 }
  0x4d   :  { %558 = vmatpush3.bf16.msra.mxu0 %v555_v32  ;;  %586 = vmatpush3.bf16.msra.mxu1 %v583_v35 }
  0x4e   :  { %560 = vmatprep.subr.bf16.mxu0 %v559_v38  ;;  %588 = vmatprep.subr.bf16.mxu1 %v587_v41 }
  0x51   :  { %562 = vmatpush3.bf16.msra.mxu0 %v559_v38  ;;  %590 = vmatpush3.bf16.msra.mxu1 %v587_v41 }
  0x52   :  { %564 = vmatprep.subr.bf16.mxu0 %v563_v44  ;;  %592 = vmatprep.subr.bf16.mxu1 %v591_v45 }
  0x55   :  { %566 = vmatpush3.bf16.msra.mxu0 %v563_v44  ;;  %594 = vmatpush3.bf16.msra.mxu1 %v591_v45 }
  0x56   :  { %596 = vmatprep.subr.bf16.mxu1 %v595_v49  ;;  %600 = vmatprep.subr.bf16.mxu0 %v599_v53 }
  0x58   :  { %463 = vmatmul.mubr.f32.vlgmr.msra.gmra.mrb[0].mxu0 %v68_v46 }
  0x59   :  { %598 = vmatpush3.bf16.msra.mxu1 %v595_v49  ;;  %602 = vmatpush3.bf16.msra.mxu0 %v599_v53 }
  0x5a   :  { %604 = vmatprep.subr.bf16.mxu0 %v603_v55 }
  0x5d   :  { %606 = vmatpush3.bf16.msra.mxu0 %v603_v55 }
  0x5e   :  { %608 = vmatprep.subr.bf16.mxu0 %v607_v58 }
  0x61   :  { %610 = vmatpush3.bf16.msra.mxu0 %v607_v58 }
  0x62   :  { %612 = vmatprep.subr.bf16.mxu0 %v611_v61 }
  0x65   :  { %614 = vmatpush3.bf16.msra.mxu0 %v611_v61 }
  0x66   :  { %616 = vmatprep.subr.bf16.mxu0 %v615_v0 }
  0x69   :  { %618 = vmatpush3.bf16.msra.mxu0 %v615_v0 }
  0x6a   :  { %620 = vmatprep.subr.bf16.mxu0 %v619_v3 }
  0x6d   :  { %622 = vmatpush3.bf16.msra.mxu0 %v619_v3 }
  0x6e   :  { %624 = vmatprep.subr.bf16.mxu0 %v623_v6 }
  0x71   :  { %626 = vmatpush3.bf16.msra.mxu0 %v623_v6 }
  0x72   :  { %628 = vmatprep.subr.bf16.mxu0 %v627_v14 }
  0x75   :  { %630 = vmatpush3.bf16.msra.mxu0 %v627_v14 }
 0x12b   :  { %v464_v8 = vpop.f32.mrb[0].mxu0 }
 0x12c   :  { %v158_v9 = vpop.f32.mrb[1].mxu0  ;;  %v164_v11 = vadd.f32 %v464_v8, %v373_v7 }
 0x12d   :  { %v159_v10 = vadd.f32 %v373_v7, %v158_v9 }
 0x12f   :  { %497 = vmatprep.mubr.f32.mxu1 %v159_v10 }
 0x130   :  { %498 = vmatmul.mubr.f32.vlgmr.msra.gmra.mrb[0].mxu1 %v164_v11 }
 0x203   :  { %v499_v16 = vpop.f32.mrb[0].mxu1 }
 0x204   :  { %v262_v17 = vadd.f32 %v499_v16, %v374_v15  ;;  %v256_v18 = vpop.f32.mrb[1].mxu1 }
 0x205   :  { %v257_v19 = vadd.f32 %v374_v15, %v256_v18 }
 0x206   :  { %v266_v21 = vmax.f32 %v262_v17, 0.0 }
 0x207   :  { %v265_v20 = vmax.f32 %v257_v19, 0.0 }
 0x209   :  { %532 = vmatprep.mubr.f32.mxu0 %v265_v20 }
 0x20a   :  { %533 = vmatmul.mubr.f32.vlgmr.msra.gmra.mrb[2].mxu0 %v266_v21 }
 0x2dd   :  { %v534_v23 = vpop.f32.mrb[2].mxu0 }
 0x2de   :  { %v362_v24 = vadd.f32 %v534_v23, %v375_v22  ;;  %v356_v25 = vpop.f32.mrb[3].mxu0 }
 0x2df   :  { %v357_v26 = vadd.f32 %v375_v22, %v356_v25 }
 0x2e0   :  { %366 = vst [vmem:[%s831_s7 + $0x8] sm:$0xff] %v362_v24 }
 0x2e1   :  { %365 = vst [vmem:[%s831_s7] sm:$0xff] %v357_v26 }
 0x2e2   :  { %371 = vsyncpa [#allocation3], 1 }
 0x2e3   :  { %372 = vsyncpa [#allocation5], 1 }

// kernel: ann_forward.1
= control target key start
LH: loop header
LB: loop body
LE: loop exit
PB: predicated region body
PF: predicated region fallthrough
CT: control target
= control target key end

     0   :  { %12 = vsyncpa [#allocation3], 0  ;;  %s824_s0 = inlined_call_operand.vmem [shape: f32[16,128], index: 0, kind: input, shape index: {}]   ;;  %s825_s1 = inlined_call_operand.hbm [shape: f32[128,128], index: 1, kind: input, shape index: {}]   ;;  %s826_s2 = inlined_call_operand.vmem [shape: f32[1,128], index: 2, kind: input, shape index: {}]   ;;  %s827_s3 = inlined_call_operand.hbm [shape: f32[128,128], index: 3, kind: input, shape index: {}]   ;;  %s828_s4 = inlined_call_operand.vmem [shape: f32[1,128], index: 4, kind: input, shape index: {}]   ;;  %s829_s5 = inlined_call_operand.hbm [shape: f32[128,128], index: 5, kind: input, shape index: {}]   ;;  %s830_s6 = inlined_call_operand.vmem [shape: f32[1,128], index: 6, kind: input, shape index: {}]   ;;  %s831_s7 = inlined_call_operand.vmem [shape: f32[16,128], index: 7, kind: output, shape index: {}]  }
   0x1   :  { %13 = vsyncpa [#allocation5], 0  ;;  %s706_s24 = smov [#allocation4]   ;;  %s707_s26 = smov [#allocation2]  }
   0x2   :  { %s35_s25 = sshll.u32 %s706_s24, 4  ;;  %s21_s27 = sshll.u32 %s707_s26, 4  ;;  %s36_s25 = int_to_ptr.vmem [resolvable:$true] %s35_s25  ;;  %s751_s27 = int_to_ptr.vmem [resolvable:$true] %s21_s27 }
   0x3   :  { %s636_s30 = scalar_lea.hbm %s827_s3, 2048 }
   0x4   :  { %p637_p0 = scmp.ne.s32.totalorder %s827_s3, %s636_s30  ;;  %p640_p1 = scmp.lt.u32.totalorder %s636_s30, %s827_s3 }
   0x6   :  { %p642_p2 = pnand %p640_p1, %p637_p0 }
   0x8   :  { %645 = shalt.err (!%p642_p2)
}
   0x9   :  { %s646_s12 = scalar_lea.vmem %s36_s25, 2048  ;;  %p651_p4 = scmp.lt.s32.totalorder %s36_s25, %s36_s25 }
   0xa   :  { %p647_p3 = scmp.ne.s32.totalorder %s36_s25, %s646_s12  ;;  %p652_p5 = scmp.lt.s32.totalorder %s646_s12, %s646_s12 }
   0xc   :  { %p653_p6 = por %p652_p5, %p651_p4 }
   0xe   :  { %p654_p7 = pnand %p653_p6, %p647_p3 }
  0x10   :  { %657 = shalt.err (!%p654_p7)
}
  0x11   :  { %s708_s13 = smov 128   ;;  %s709_s14 = smov 8  }
  0x12   :  { %41 = dma.hbm_to_vmem [thread:$0]  %s827_s3, 2048, %s36_s25, [#allocation5], %s708_s13, %s708_s13, %s709_s14  }
  0x13   :  { %s658_s19 = scalar_lea.hbm %s825_s1, 2048 }
  0x14   :  { %p659_p8 = scmp.ne.s32.totalorder %s825_s1, %s658_s19  ;;  %p662_p9 = scmp.lt.u32.totalorder %s658_s19, %s825_s1 }
  0x16   :  { %p664_p10 = pnand %p662_p9, %p659_p8 }
  0x18   :  { %667 = shalt.err (!%p664_p10)
}
  0x19   :  { %s668_s24 = scalar_lea.vmem %s751_s27, 2048  ;;  %p673_p12 = scmp.lt.s32.totalorder %s751_s27, %s751_s27 }
  0x1a   :  { %p669_p11 = scmp.ne.s32.totalorder %s751_s27, %s668_s24  ;;  %p674_p13 = scmp.lt.s32.totalorder %s668_s24, %s668_s24 }
  0x1c   :  { %p675_p0 = por %p674_p13, %p673_p12 }
  0x1e   :  { %p676_p1 = pnand %p675_p0, %p669_p11 }
  0x20   :  { %679 = shalt.err (!%p676_p1)
}
  0x21   :  { %27 = dma.hbm_to_vmem [thread:$0]  %s825_s1, 2048, %s751_s27, [#allocation3], %s708_s13, %s708_s13, %s709_s14  }
  0x22   :  { %s710_s26 = smov [#allocation6]   ;;  %s680_s8 = scalar_lea.hbm %s829_s5, 2048 }
  0x23   :  { %s49_s28 = sshll.u32 %s710_s26, 4  ;;  %p681_p2 = scmp.ne.s32.totalorder %s829_s5, %s680_s8  ;;  %s50_s28 = int_to_ptr.vmem [resolvable:$true] %s49_s28 }
  0x24   :  { %p684_p3 = scmp.lt.u32.totalorder %s680_s8, %s829_s5 }
  0x26   :  { %p686_p4 = pnand %p684_p3, %p681_p2 }
  0x28   :  { %689 = shalt.err (!%p686_p4)
}
  0x29   :  { %s690_s15 = scalar_lea.vmem %s50_s28, 2048  ;;  %p695_p6 = scmp.lt.s32.totalorder %s50_s28, %s50_s28 }
  0x2a   :  { %p691_p5 = scmp.ne.s32.totalorder %s50_s28, %s690_s15  ;;  %p696_p7 = scmp.lt.s32.totalorder %s690_s15, %s690_s15 }
  0x2c   :  { %p697_p8 = por %p696_p7, %p695_p6 }
  0x2e   :  { %p698_p9 = pnand %p697_p8, %p691_p5 }
  0x30   :  { %701 = shalt.err (!%p698_p9)
}
  0x31   :  { %55 = dma.hbm_to_vmem [thread:$0]  %s829_s5, 2048, %s50_s28, [#allocation5], %s708_s13, %s708_s13, %s709_s14  }
  0x32   :  { %702 = dma.done.wait [#allocation3], 2048  }
  0x33   :  { %703 = vsyncadd [#allocation3], 4294965248 }
  0x34   :  { %704 = dma.done.wait [#allocation5], 4096  }
  0x35   :  { %705 = vsyncadd [#allocation5], 4294963200  ;;  %v69_v0 = vld [vmem:[#allocation2] sm:$0xff]  ;;  %v70_v1 = vld [vmem:[#allocation2 + $0x8] sm:$0xff] }
  0x36   :  { %v71_v2 = vld [vmem:[#allocation2 + $0x10] sm:$0xff]  ;;  %v535_v3 = vpack.c.bf16 %v70_v1, %v69_v0  ;;  %v72_v4 = vld [vmem:[#allocation2 + $0x18] sm:$0xff]  ;;  %v73_v6 = vld [vmem:[#allocation2 + $0x20] sm:$0xff] }
  0x37   :  { %v539_v5 = vpack.c.bf16 %v72_v4, %v71_v2  ;;  %v74_v7 = vld [vmem:[#allocation2 + $0x28] sm:$0xff]  ;;  %v75_v9 = vld [vmem:[#allocation2 + $0x30] sm:$0xff]  ;;  %v76_v10 = vld [vmem:[#allocation2 + $0x38] sm:$0xff] }
  0x38   :  { %536 = vmatprep.subr.bf16.mxu0 %v535_v3  ;;  %v543_v8 = vpack.c.bf16 %v74_v7, %v73_v6  ;;  %v67_v11 = vld [vmem:[%s824_s0] sm:$0xff]  ;;  %v168_v13 = vld [vmem:[#allocation4 + $0x8] sm:$0xff]  ;;  %v169_v14 = vld [vmem:[#allocation4 + $0x10] sm:$0xff]  ;;  %v547_v20 = vpack.c.bf16 %v76_v10, %v75_v9 }
  0x39   :  { %538 = vmatpush3.bf16.msra.mxu0 %v535_v3  ;;  %462 = vmatprep.mubr.f32.mxu0 %v67_v11  ;;  %v167_v12 = vld [vmem:[#allocation4] sm:$0xff]  ;;  %v170_v16 = vld [vmem:[#allocation4 + $0x18] sm:$0xff]  ;;  %v172_v19 = vld [vmem:[#allocation4 + $0x28] sm:$0xff] }
  0x3a   :  { %540 = vmatprep.subr.bf16.mxu0 %v539_v5  ;;  %v567_v15 = vpack.c.bf16 %v168_v13, %v167_v12  ;;  %v571_v17 = vpack.c.bf16 %v170_v16, %v169_v14  ;;  %v171_v18 = vld [vmem:[#allocation4 + $0x20] sm:$0xff]  ;;  %v78_v22 = vld [vmem:[#allocation2 + $0x48] sm:$0xff]  ;;  %v173_v24 = vld [vmem:[#allocation4 + $0x30] sm:$0xff] }
  0x3b   :  { %v77_v21 = vld [vmem:[#allocation2 + $0x40] sm:$0xff]  ;;  %v575_v23 = vpack.c.bf16 %v172_v19, %v171_v18  ;;  %v174_v25 = vld [vmem:[#allocation4 + $0x38] sm:$0xff]  ;;  %v79_v27 = vld [vmem:[#allocation2 + $0x50] sm:$0xff] }
  0x3c   :  { %568 = vmatprep.subr.bf16.mxu1 %v567_v15  ;;  %v551_v26 = vpack.c.bf16 %v78_v22, %v77_v21  ;;  %v80_v28 = vld [vmem:[#allocation2 + $0x58] sm:$0xff]  ;;  %v579_v29 = vpack.c.bf16 %v174_v25, %v173_v24  ;;  %v175_v30 = vld [vmem:[#allocation4 + $0x40] sm:$0xff]  ;;  %v176_v31 = vld [vmem:[#allocation4 + $0x48] sm:$0xff] }
  0x3d   :  { %542 = vmatpush3.bf16.msra.mxu0 %v539_v5  ;;  %570 = vmatpush3.bf16.msra.mxu1 %v567_v15  ;;  %v555_v32 = vpack.c.bf16 %v80_v28, %v79_v27  ;;  %v81_v33 = vld [vmem:[#allocation2 + $0x60] sm:$0xff]  ;;  %v82_v34 = vld [vmem:[#allocation2 + $0x68] sm:$0xff]  ;;  %v583_v35 = vpack.c.bf16 %v176_v31, %v175_v30  ;;  %v177_v36 = vld [vmem:[#allocation4 + $0x50] sm:$0xff] }
  0x3e   :  { %544 = vmatprep.subr.bf16.mxu0 %v543_v8  ;;  %572 = vmatprep.subr.bf16.mxu1 %v571_v17  ;;  %v178_v37 = vld [vmem:[#allocation4 + $0x58] sm:$0xff]  ;;  %v559_v38 = vpack.c.bf16 %v82_v34, %v81_v33  ;;  %v83_v39 = vld [vmem:[#allocation2 + $0x70] sm:$0xff]  ;;  %v179_v42 = vld [vmem:[#allocation4 + $0x60] sm:$0xff] }
  0x3f   :  { %v84_v40 = vld [vmem:[#allocation2 + $0x78] sm:$0xff]  ;;  %v587_v41 = vpack.c.bf16 %v178_v37, %v177_v36  ;;  %v180_v43 = vld [vmem:[#allocation4 + $0x68] sm:$0xff]  ;;  %v181_v47 = vld [vmem:[#allocation4 + $0x70] sm:$0xff] }
  0x40   :  { %v563_v44 = vpack.c.bf16 %v84_v40, %v83_v39  ;;  %v591_v45 = vpack.c.bf16 %v180_v43, %v179_v42  ;;  %v68_v46 = vld [vmem:[%s824_s0 + $0x8] sm:$0xff]  ;;  %v182_v48 = vld [vmem:[#allocation4 + $0x78] sm:$0xff]  ;;  %v267_v50 = vld [vmem:[#allocation6] sm:$0xff] }
  0x41   :  { %546 = vmatpush3.bf16.msra.mxu0 %v543_v8  ;;  %574 = vmatpush3.bf16.msra.mxu1 %v571_v17  ;;  %v595_v49 = vpack.c.bf16 %v182_v48, %v181_v47  ;;  %v268_v51 = vld [vmem:[#allocation6 + $0x8] sm:$0xff]  ;;  %v269_v52 = vld [vmem:[#allocation6 + $0x10] sm:$0xff]  ;;  %v270_v54 = vld [vmem:[#allocation6 + $0x18] sm:$0xff] }
  0x42   :  { %548 = vmatprep.subr.bf16.mxu0 %v547_v20  ;;  %576 = vmatprep.subr.bf16.mxu1 %v575_v23  ;;  %v599_v53 = vpack.c.bf16 %v268_v51, %v267_v50  ;;  %v603_v55 = vpack.c.bf16 %v270_v54, %v269_v52  ;;  %v271_v56 = vld [vmem:[#allocation6 + $0x20] sm:$0xff]  ;;  %v272_v57 = vld [vmem:[#allocation6 + $0x28] sm:$0xff]  ;;  %v273_v59 = vld [vmem:[#allocation6 + $0x30] sm:$0xff] }
  0x43   :  { %v607_v58 = vpack.c.bf16 %v272_v57, %v271_v56  ;;  %v274_v60 = vld [vmem:[#allocation6 + $0x38] sm:$0xff]  ;;  %v275_v62 = vld [vmem:[#allocation6 + $0x40] sm:$0xff]  ;;  %v276_v63 = vld [vmem:[#allocation6 + $0x48] sm:$0xff] }
  0x44   :  { %v611_v61 = vpack.c.bf16 %v274_v60, %v273_v59  ;;  %v615_v0 = vpack.c.bf16 %v276_v63, %v275_v62  ;;  %v277_v1 = vld [vmem:[#allocation6 + $0x50] sm:$0xff]  ;;  %v278_v2 = vld [vmem:[#allocation6 + $0x58] sm:$0xff]  ;;  %v279_v4 = vld [vmem:[#allocation6 + $0x60] sm:$0xff] }
  0x45   :  { %550 = vmatpush3.bf16.msra.mxu0 %v547_v20  ;;  %578 = vmatpush3.bf16.msra.mxu1 %v575_v23  ;;  %v619_v3 = vpack.c.bf16 %v278_v2, %v277_v1  ;;  %v280_v5 = vld [vmem:[#allocation6 + $0x68] sm:$0xff]  ;;  %v373_v7 = vld [vmem:[%s826_s2] ss:$0 sm:$0xff]  ;;  %v281_v12 = vld [vmem:[#allocation6 + $0x70] sm:$0xff] }
  0x46   :  { %552 = vmatprep.subr.bf16.mxu0 %v551_v26  ;;  %580 = vmatprep.subr.bf16.mxu1 %v579_v29  ;;  %v623_v6 = vpack.c.bf16 %v280_v5, %v279_v4  ;;  %v282_v13 = vld [vmem:[#allocation6 + $0x78] sm:$0xff]  ;;  %v374_v15 = vld [vmem:[%s828_s4] ss:$0 sm:$0xff] }
  0x47   :  { %v627_v14 = vpack.c.bf16 %v282_v13, %v281_v12  ;;  %v375_v22 = vld [vmem:[%s830_s6] ss:$0 sm:$0xff] }
  0x49   :  { %554 = vmatpush3.bf16.msra.mxu0 %v551_v26  ;;  %582 = vmatpush3.bf16.msra.mxu1 %v579_v29 }
  0x4a   :  { %556 = vmatprep.subr.bf16.mxu0 %v555_v32  ;;  %584 = vmatprep.subr.bf16.mxu1 %v583_v35 }
  0x4d   :  { %558 = vmatpush3.bf16.msra.mxu0 %v555_v32  ;;  %586 = vmatpush3.bf16.msra.mxu1 %v583_v35 }
  0x4e   :  { %560 = vmatprep.subr.bf16.mxu0 %v559_v38  ;;  %588 = vmatprep.subr.bf16.mxu1 %v587_v41 }
  0x51   :  { %562 = vmatpush3.bf16.msra.mxu0 %v559_v38  ;;  %590 = vmatpush3.bf16.msra.mxu1 %v587_v41 }
  0x52   :  { %564 = vmatprep.subr.bf16.mxu0 %v563_v44  ;;  %592 = vmatprep.subr.bf16.mxu1 %v591_v45 }
  0x55   :  { %566 = vmatpush3.bf16.msra.mxu0 %v563_v44  ;;  %594 = vmatpush3.bf16.msra.mxu1 %v591_v45 }
  0x56   :  { %596 = vmatprep.subr.bf16.mxu1 %v595_v49  ;;  %600 = vmatprep.subr.bf16.mxu0 %v599_v53 }
  0x58   :  { %463 = vmatmul.mubr.f32.vlgmr.msra.gmra.mrb[0].mxu0 %v68_v46 }
  0x59   :  { %598 = vmatpush3.bf16.msra.mxu1 %v595_v49  ;;  %602 = vmatpush3.bf16.msra.mxu0 %v599_v53 }
  0x5a   :  { %604 = vmatprep.subr.bf16.mxu0 %v603_v55 }
  0x5d   :  { %606 = vmatpush3.bf16.msra.mxu0 %v603_v55 }
  0x5e   :  { %608 = vmatprep.subr.bf16.mxu0 %v607_v58 }
  0x61   :  { %610 = vmatpush3.bf16.msra.mxu0 %v607_v58 }
  0x62   :  { %612 = vmatprep.subr.bf16.mxu0 %v611_v61 }
  0x65   :  { %614 = vmatpush3.bf16.msra.mxu0 %v611_v61 }
  0x66   :  { %616 = vmatprep.subr.bf16.mxu0 %v615_v0 }
  0x69   :  { %618 = vmatpush3.bf16.msra.mxu0 %v615_v0 }
  0x6a   :  { %620 = vmatprep.subr.bf16.mxu0 %v619_v3 }
  0x6d   :  { %622 = vmatpush3.bf16.msra.mxu0 %v619_v3 }
  0x6e   :  { %624 = vmatprep.subr.bf16.mxu0 %v623_v6 }
  0x71   :  { %626 = vmatpush3.bf16.msra.mxu0 %v623_v6 }
  0x72   :  { %628 = vmatprep.subr.bf16.mxu0 %v627_v14 }
  0x75   :  { %630 = vmatpush3.bf16.msra.mxu0 %v627_v14 }
 0x12b   :  { %v464_v8 = vpop.f32.mrb[0].mxu0 }
 0x12c   :  { %v158_v9 = vpop.f32.mrb[1].mxu0  ;;  %v164_v11 = vadd.f32 %v464_v8, %v373_v7 }
 0x12d   :  { %v159_v10 = vadd.f32 %v373_v7, %v158_v9 }
 0x12f   :  { %497 = vmatprep.mubr.f32.mxu1 %v159_v10 }
 0x130   :  { %498 = vmatmul.mubr.f32.vlgmr.msra.gmra.mrb[0].mxu1 %v164_v11 }
 0x203   :  { %v499_v16 = vpop.f32.mrb[0].mxu1 }
 0x204   :  { %v262_v17 = vadd.f32 %v499_v16, %v374_v15  ;;  %v256_v18 = vpop.f32.mrb[1].mxu1 }
 0x205   :  { %v257_v19 = vadd.f32 %v374_v15, %v256_v18 }
 0x206   :  { %v266_v21 = vmax.f32 %v262_v17, 0.0 }
 0x207   :  { %v265_v20 = vmax.f32 %v257_v19, 0.0 }
 0x209   :  { %532 = vmatprep.mubr.f32.mxu0 %v265_v20 }
 0x20a   :  { %533 = vmatmul.mubr.f32.vlgmr.msra.gmra.mrb[2].mxu0 %v266_v21 }
 0x2dd   :  { %v534_v23 = vpop.f32.mrb[2].mxu0 }
 0x2de   :  { %v362_v24 = vadd.f32 %v534_v23, %v375_v22  ;;  %v356_v25 = vpop.f32.mrb[3].mxu0 }
 0x2df   :  { %v357_v26 = vadd.f32 %v375_v22, %v356_v25 }
 0x2e0   :  { %366 = vst [vmem:[%s831_s7 + $0x8] sm:$0xff] %v362_v24 }
 0x2e1   :  { %365 = vst [vmem:[%s831_s7] sm:$0xff] %v357_v26 }
 0x2e2   :  { %371 = vsyncpa [#allocation3], 1 }
 0x2e3   :  { %372 = vsyncpa [#allocation5], 1 }

</bundles_post_ra>
